<compile_context>
chip_gen: v6e
topology: v6e:2x2x1
jax: 0.10.0
libtpu: 0.0.40
codegen_flags: <defaults>
</compile_context>

<pallas_src>
import functools

import jax
import jax.numpy as jnp
from jax.experimental import pallas as pl
from jax.experimental.pallas import tpu as pltpu

LANE = 128     # vreg lane width
SUBLANE = 8    # vreg sublane count (f32)


def _round_up(x, m):
    return ((x + m - 1) // m) * m


def _policy_kernel(n_layers, row_offsets, in_dims, out_dim, output_bound,
                   x_ref, w_ref, b_ref, mu_ref):
    """x_ref: (TB, d_in) [MXU dtype]  w_ref: (sum(in_dims), 128) [MXU dtype]
    b_ref: (n_layers, 128) f32        mu_ref: (TB, out_dim) f32.

    Layer i's weight lives in rows [row_offsets[i], row_offsets[i]+in_dims[i])
    of the slab; its bias is row i of the bias slab. Columns are zero-padded to
    128 lanes so padded lanes stay exactly zero through the ReLU stack; only
    the first out_dim lanes of the head are stored to HBM.
    """
    h = x_ref[...]                                   # MXU-dtype activations
    for i in range(n_layers):                        # statically unrolled
        r0, din = row_offsets[i], in_dims[i]
        w = w_ref[r0:r0 + din, :]                    # (din, 128) static slice
        z = jnp.dot(h, w, preferred_element_type=jnp.float32)
        z = z + b_ref[i:i + 1, :]                    # f32 bias add (v5e-safe)
        if i < n_layers - 1:
            # Hidden: ReLU in f32, then cast once for the next MXU pass.
            h = jnp.maximum(z, 0.0).astype(w_ref.dtype)
        else:
            # mu head: narrow store of the first out_dim lanes only.
            mu = output_bound * jnp.tanh(z[:, :out_dim])
            mu_ref[...] = mu.astype(mu_ref.dtype)


def pack_params(params, input_size, *, mxu_dtype=jnp.bfloat16):
    """One-time packing of all Linear layers into a single weight slab
    [sum(in_dims), 128] and a bias slab [n_layers, 128]. Weights are stored
    [in_dim, out_dim] so the kernel computes y = x @ W + b (== PyTorch)."""
    hidden = params["hidden"]
    w_mu, b_mu, log_std = params["w_mu"], params["b_mu"], params["log_std"]
    weights = [w for (w, _) in hidden] + [w_mu]
    biases = [b for (_, b) in hidden] + [b_mu]
    n_layers = len(weights)
    out_dim = int(w_mu.shape[1])

    widths = [int(w.shape[1]) for w in weights]
    # Guard against silent truncation in the 128-lane slab packing.
    assert all(wd <= LANE for wd in widths), (
        f"all hidden widths and output_size must be <= {LANE}, got {widths}")
    assert int(weights[0].shape[0]) == input_size

    # Fan-in (sublane) alignment for the weight slab: 8 rows for f32 operands,
    # 16 for bf16 (packed sublanes), so every layer's row offset is tile-aligned.
    row_align = max(SUBLANE, 32 // jnp.dtype(mxu_dtype).itemsize)
    d_in = _round_up(input_size, row_align)
    in_dims = [d_in] + [LANE] * (n_layers - 1)

    w_rows = []
    for i, w in enumerate(weights):
        wi = jnp.zeros((in_dims[i], LANE), jnp.float32)
        wi = wi.at[:w.shape[0], :w.shape[1]].set(w.astype(jnp.float32))
        w_rows.append(wi)
    w_slab = jnp.concatenate(w_rows, axis=0).astype(mxu_dtype)  # pre-cast once
    b_slab = jnp.zeros((n_layers, LANE), jnp.float32)
    for i, b in enumerate(biases):
        b_slab = b_slab.at[i, :b.shape[0]].set(b.astype(jnp.float32))

    row_offsets = [0]
    for d in in_dims[:-1]:
        row_offsets.append(row_offsets[-1] + d)

    return {
        "w_slab": w_slab,
        "b_slab": b_slab,
        "row_offsets": tuple(row_offsets),
        "in_dims": tuple(in_dims),
        "input_size": int(input_size),
        "d_in": int(d_in),
        "out_dim": out_dim,
        "n_layers": n_layers,
        "mxu_dtype": mxu_dtype,
        # std = exp(log_std) is input-independent: compute once here.
        "std": jnp.exp(log_std.astype(jnp.float32)),
    }


def continuous_policy_forward(x, packed, output_bound, *,
                              batch_tile=4096, core_parallel=False):
    """Fused MLP policy forward. `packed` comes from pack_params()."""
    B, input_size = x.shape
    assert input_size == packed["input_size"]
    d_in, out_dim = packed["d_in"], packed["out_dim"]
    mxu_dtype = packed["mxu_dtype"]
    w_slab, b_slab = packed["w_slab"], packed["b_slab"]

    # Batch tiling: TB is a sublane multiple, capped at ceil(B/2) so the grid
    # has >= 2 steps whenever B > 8 (feeds both v7x TensorCores). Even at
    # TB=4096 the double-buffered (TB,d_in)+(TB,128)+(TB,out_dim) tiles are a
    # few MB -> far below the scoped-VMEM default on v5e/v6e/v7x.
    half = _round_up(max((B + 1) // 2, SUBLANE), SUBLANE)
    TB = max(SUBLANE, min(batch_tile, half))
    B_pad = _round_up(B, TB)

    if B_pad == B and d_in == input_size:
        x_in = x.astype(mxu_dtype)               # no pad copy; cast only
    else:
        x_in = jnp.zeros((B_pad, d_in), mxu_dtype)
        x_in = x_in.at[:B, :input_size].set(x.astype(mxu_dtype))

    kernel = functools.partial(
        _policy_kernel, packed["n_layers"], packed["row_offsets"],
        packed["in_dims"], out_dim, float(output_bound))

    # Resident parameter slabs: constant block index, never revolve ->
    # single-buffer them (double-buffering would only waste VMEM).
    w_spec = pl.BlockSpec(w_slab.shape, lambda i: (0, 0),
                          pipeline_mode=pl.Buffered(1))
    b_spec = pl.BlockSpec(b_slab.shape, lambda i: (0, 0),
                          pipeline_mode=pl.Buffered(1))

    sem = (pltpu.CORE_PARALLEL if core_parallel else pltpu.PARALLEL,)

    mu_full = pl.pallas_call(
        kernel,
        grid=(B_pad // TB,),
        out_shape=jax.ShapeDtypeStruct((B_pad, out_dim), jnp.float32),
        in_specs=[
            pl.BlockSpec((TB, d_in), lambda i: (i, 0)),        # x batch tile
            w_spec,                                            # weights resident
            b_spec,                                            # biases resident
        ],
        out_specs=pl.BlockSpec((TB, out_dim), lambda i: (i, 0)),  # narrow mu
        compiler_params=pltpu.CompilerParams(dimension_semantics=sem),
    )(x_in, w_slab, b_slab)

    mu = mu_full if B_pad == B else mu_full[:B]
    std = jnp.broadcast_to(packed["std"], mu.shape)
    return mu, std


def init_params(key, input_size, layers_dim, output_size):
    """Deterministic init mimicking torch.nn.Linear's U(-1/sqrt(fan_in), +)."""
    params = {"hidden": []}
    dims = [input_size] + list(layers_dim)
    for i in range(len(layers_dim)):
        key, kw, kb = jax.random.split(key, 3)
        bound = 1.0 / jnp.sqrt(dims[i])
        w = jax.random.uniform(kw, (dims[i], dims[i + 1]), jnp.float32,
                               -bound, bound)
        b = jax.random.uniform(kb, (dims[i + 1],), jnp.float32, -bound, bound)
        params["hidden"].append((w, b))
    key, kw, kb = jax.random.split(key, 3)
    bound = 1.0 / jnp.sqrt(layers_dim[-1])
    params["w_mu"] = jax.random.uniform(kw, (layers_dim[-1], output_size),
                                        jnp.float32, -bound, bound)
    params["b_mu"] = jax.random.uniform(kb, (output_size,), jnp.float32,
                                        -bound, bound)
    params["log_std"] = jnp.zeros((output_size,), jnp.float32)  # torch.zeros
    return params


def reference_forward(x, params, output_bound):
    h = x
    for w, b in params["hidden"]:
        h = jax.nn.relu(h @ w + b)
    mu = output_bound * jnp.tanh(h @ params["w_mu"] + params["b_mu"])
    std = jnp.broadcast_to(jnp.exp(params["log_std"]), mu.shape)
    return mu, std


if __name__ == "__main__":
    # Module config: input_size=16, layers_dim=[32, 32], output_size=8, bound=2.0
    input_size, layers_dim, output_size, output_bound = 16, [32, 32], 8, 2.0
    batch = 8

    key = jax.random.PRNGKey(0)
    key, kx = jax.random.split(key)
    x = jax.random.normal(kx, (batch, input_size), jnp.float32)
    params = init_params(key, input_size, layers_dim, output_size)
    mu_ref, std_ref = reference_forward(x, params, output_bound)

    # --- f32 MXU path: exact semantics check against the reference. ---
    packed_f32 = pack_params(params, input_size, mxu_dtype=jnp.float32)
    mu32, std32 = continuous_policy_forward(x, packed_f32, output_bound)
    jax.block_until_ready((mu32, std32))
    assert mu32.shape == (batch, output_size) and std32.shape == (batch, output_size)
    assert jnp.allclose(mu32, mu_ref, atol=1e-5, rtol=1e-5)
    assert jnp.allclose(std32, std_ref, atol=1e-6, rtol=1e-6)

    # --- Default bf16 MXU path (f32 accumulation): loose tolerance per bf16. ---
    packed_bf16 = pack_params(params, input_size)  # mxu_dtype=bf16 default
    mu16, std16 = continuous_policy_forward(x, packed_bf16, output_bound)
    jax.block_until_ready((mu16, std16))
    assert mu16.shape == (batch, output_size) and std16.shape == (batch, output_size)
    assert jnp.allclose(mu16, mu_ref, atol=3e-2, rtol=3e-2)
    assert jnp.allclose(std16, std_ref, atol=1e-6, rtol=1e-6)

    print("KERNEL_OK")
</pallas_src>

<mosaic_0001>
module attributes {stable_mosaic.version = 11 : i64} {
  func.func @_policy_kernel(%arg0: i32, %arg1: memref<8x16xf32, #tpu.memory_space<vmem>>, %arg2: memref<272x128xf32, #tpu.memory_space<vmem>>, %arg3: memref<3x128xf32, #tpu.memory_space<vmem>>, %arg4: memref<8x8xf32, #tpu.memory_space<vmem>>) attributes {dimension_semantics = [#tpu.dimension_semantics<parallel>], iteration_bounds = array<i64: 1>, scalar_prefetch = 0 : i64, scratch_operands = 0 : i64, tpu.core_type = #tpu.core_type<tc>, window_params = [{transform_indices = @transform_0, window_bounds = array<i64: 8, 16>}, {pipeline_mode = #tpu.pipeline_mode<synchronous>, transform_indices = @transform_1, window_bounds = array<i64: 272, 128>}, {pipeline_mode = #tpu.pipeline_mode<synchronous>, transform_indices = @transform_2, window_bounds = array<i64: 3, 128>}, {transform_indices = @transform_3, window_bounds = array<i64: 8, 8>}]} {
    %c0 = arith.constant 0 : index
    %c0_0 = arith.constant 0 : index
    %0 = vector.load %arg1[%c0, %c0_0] : memref<8x16xf32, #tpu.memory_space<vmem>>, vector<8x16xf32>
    %c0_1 = arith.constant 0 : index
    %c0_2 = arith.constant 0 : index
    %1 = vector.load %arg2[%c0_1, %c0_2] : memref<272x128xf32, #tpu.memory_space<vmem>>, vector<16x128xf32>
    %cst = arith.constant dense<0.000000e+00> : vector<8x128xf32>
    %2 = tpu.matmul %0, %1, %cst {dimension_numbers = #tpu.dot_dimension_numbers<[1], [0], [0], [1], [0, 0, 1, 1], [], []>} : vector<8x16xf32>, vector<16x128xf32>, vector<8x128xf32> -> vector<8x128xf32>
    %c0_3 = arith.constant 0 : index
    %c0_4 = arith.constant 0 : index
    %3 = vector.load %arg3[%c0_3, %c0_4] : memref<3x128xf32, #tpu.memory_space<vmem>>, vector<1x128xf32>
    %4 = vector.broadcast %3 : vector<1x128xf32> to vector<8x128xf32>
    %5 = arith.addf %2, %4 : vector<8x128xf32>
    %cst_5 = arith.constant 0.000000e+00 : f32
    %6 = vector.broadcast %cst_5 : f32 to vector<8x128xf32>
    %7 = arith.maximumf %5, %6 : vector<8x128xf32>
    %c16 = arith.constant 16 : index
    %c0_6 = arith.constant 0 : index
    %8 = vector.load %arg2[%c16, %c0_6] : memref<272x128xf32, #tpu.memory_space<vmem>>, vector<128x128xf32>
    %cst_7 = arith.constant dense<0.000000e+00> : vector<8x128xf32>
    %9 = tpu.matmul %7, %8, %cst_7 {dimension_numbers = #tpu.dot_dimension_numbers<[1], [0], [0], [1], [0, 0, 1, 1], [], []>} : vector<8x128xf32>, vector<128x128xf32>, vector<8x128xf32> -> vector<8x128xf32>
    %c1 = arith.constant 1 : index
    %c0_8 = arith.constant 0 : index
    %10 = vector.load %arg3[%c1, %c0_8] : memref<3x128xf32, #tpu.memory_space<vmem>>, vector<1x128xf32>
    %11 = vector.broadcast %10 : vector<1x128xf32> to vector<8x128xf32>
    %12 = arith.addf %9, %11 : vector<8x128xf32>
    %cst_9 = arith.constant 0.000000e+00 : f32
    %13 = vector.broadcast %cst_9 : f32 to vector<8x128xf32>
    %14 = arith.maximumf %12, %13 : vector<8x128xf32>
    %c144 = arith.constant 144 : index
    %c0_10 = arith.constant 0 : index
    %15 = vector.load %arg2[%c144, %c0_10] : memref<272x128xf32, #tpu.memory_space<vmem>>, vector<128x128xf32>
    %cst_11 = arith.constant dense<0.000000e+00> : vector<8x128xf32>
    %16 = tpu.matmul %14, %15, %cst_11 {dimension_numbers = #tpu.dot_dimension_numbers<[1], [0], [0], [1], [0, 0, 1, 1], [], []>} : vector<8x128xf32>, vector<128x128xf32>, vector<8x128xf32> -> vector<8x128xf32>
    %c2 = arith.constant 2 : index
    %c0_12 = arith.constant 0 : index
    %17 = vector.load %arg3[%c2, %c0_12] : memref<3x128xf32, #tpu.memory_space<vmem>>, vector<1x128xf32>
    %18 = vector.broadcast %17 : vector<1x128xf32> to vector<8x128xf32>
    %19 = arith.addf %16, %18 : vector<8x128xf32>
    %20 = vector.extract_strided_slice %19 {offsets = [0, 0], sizes = [8, 8], strides = [1, 1]} : vector<8x128xf32> to vector<8x8xf32>
    %21 = math.tanh %20 : vector<8x8xf32>
    %cst_13 = arith.constant 2.000000e+00 : f32
    %22 = vector.broadcast %cst_13 : f32 to vector<8x8xf32>
    %23 = arith.mulf %22, %21 : vector<8x8xf32>
    %c0_14 = arith.constant 0 : index
    %c0_15 = arith.constant 0 : index
    %24 = vector.load %arg4[%c0_14, %c0_15] : memref<8x8xf32, #tpu.memory_space<vmem>>, vector<8x8xf32>
    tpu.vector_store %arg4[%c0_14, %c0_15], %23 {strides = array<i32>} : memref<8x8xf32, #tpu.memory_space<vmem>>, vector<8x8xf32>,
    return
  }
  func.func @transform_0(%arg0: i32) -> (i32, i32) {
    %c0_i32 = arith.constant 0 : i32
    %c0_i32_0 = arith.constant 0 : i32
    return %arg0, %c0_i32 : i32, i32
  }
  func.func @transform_1(%arg0: i32) -> (i32, i32) {
    %c0_i32 = arith.constant 0 : i32
    %c0_i32_0 = arith.constant 0 : i32
    %c0_i32_1 = arith.constant 0 : i32
    return %c0_i32, %c0_i32_0 : i32, i32
  }
  func.func @transform_2(%arg0: i32) -> (i32, i32) {
    %c0_i32 = arith.constant 0 : i32
    %c0_i32_0 = arith.constant 0 : i32
    %c0_i32_1 = arith.constant 0 : i32
    return %c0_i32, %c0_i32_0 : i32, i32
  }
  func.func @transform_3(%arg0: i32) -> (i32, i32) {
    %c0_i32 = arith.constant 0 : i32
    %c0_i32_0 = arith.constant 0 : i32
    return %arg0, %c0_i32 : i32, i32
  }
}

</mosaic_0001>

<bundles_post_ra>
// kernel: tpu_custom_call.1
= control target key start
LH: loop header
LB: loop body
LE: loop exit
PB: predicated region body
PF: predicated region fallthrough
CT: control target
= control target key end

     0   :  { %8 = vsyncpa [#allocation3], 0  ;;  %s632_s0 = inlined_call_operand.hbm [shape: f32[8,16], index: 0, kind: input, shape index: {}]   ;;  %s633_s1 = inlined_call_operand.hbm [shape: f32[272,128], index: 1, kind: input, shape index: {}]   ;;  %s634_s2 = inlined_call_operand.hbm [shape: f32[3,128], index: 2, kind: input, shape index: {}]   ;;  %s635_s3 = inlined_call_operand.hbm [shape: f32[8,8], index: 3, kind: output, shape index: {}]  }
   0x1   :  { %9 = vsyncpa [#allocation6], 0 }
   0x2   :  { %10 = vsyncpa [#allocation4], 0  ;;  %s552_s12 = smov [#allocation5]  }
   0x3   :  { %s26_s13 = sshll.u32 %s552_s12, 4  ;;  %s27_s13 = int_to_ptr.vmem [resolvable:$true] %s26_s13 }
   0x4   :  { %s474_s14 = scalar_lea.vmem %s27_s13, 4352  ;;  %p479_p1 = scmp.lt.s32.totalorder %s27_s13, %s27_s13 }
   0x5   :  { %p475_p0 = scmp.ne.s32.totalorder %s27_s13, %s474_s14  ;;  %p480_p2 = scmp.lt.s32.totalorder %s474_s14, %s474_s14 }
   0x7   :  { %p481_p3 = por %p480_p2, %p479_p1 }
   0x9   :  { %p482_p4 = pnand %p481_p3, %p475_p0 }
   0xb   :  { %485 = shalt.err (!%p482_p4)
}
   0xc   :  { %s553_s15 = smov 128   ;;  %s554_s16 = smov 8  }
   0xd   :  { %32 = dma.hbm_to_vmem [thread:$0]  %s633_s1, 4352, %s27_s13, [#allocation6], %s553_s15, %s553_s15, %s554_s16  }
   0xe   :  { %s555_s19 = smov [#allocation2]   ;;  %s556_s21 = smov [#allocation7]  }
   0xf   :  { %s17_s20 = sshll.u32 %s555_s19, 4  ;;  %s39_s22 = sshll.u32 %s556_s21, 4  ;;  %s18_s20 = int_to_ptr.vmem [resolvable:$true] %s17_s20  ;;  %s40_s22 = int_to_ptr.vmem [resolvable:$true] %s39_s22 }
  0x10   :  { %s494_s23 = scalar_lea.vmem %s18_s20, 128  ;;  %p499_p6 = scmp.lt.s32.totalorder %s18_s20, %s18_s20 }
  0x11   :  { %p495_p5 = scmp.ne.s32.totalorder %s18_s20, %s494_s23  ;;  %p500_p7 = scmp.lt.s32.totalorder %s494_s23, %s494_s23 }
  0x13   :  { %p501_p8 = por %p500_p7, %p499_p6 }
  0x15   :  { %p502_p9 = pnand %p501_p8, %p495_p5 }
  0x17   :  { %505 = shalt.err (!%p502_p9)
}
  0x18   :  { %20 = dma.hbm_to_vmem [thread:$0]  %s632_s0, 128, %s18_s20, [#allocation3]  }
  0x19   :  { %s514_s26 = scalar_lea.vmem %s40_s22, 64  ;;  %p519_p11 = scmp.lt.s32.totalorder %s40_s22, %s40_s22 }
  0x1a   :  { %p515_p10 = scmp.ne.s32.totalorder %s40_s22, %s514_s26  ;;  %p520_p12 = scmp.lt.s32.totalorder %s514_s26, %s514_s26 }
  0x1c   :  { %p521_p13 = por %p520_p12, %p519_p11 }
  0x1e   :  { %p522_p0 = pnand %p521_p13, %p515_p10 }
  0x20   :  { %525 = shalt.err (!%p522_p0)
}
  0x21   :  { %42 = dma.hbm_to_vmem [thread:$0]  %s634_s2, 64, %s40_s22, [#allocation6]  }
  0x22   :  { %546 = dma.done.wait [#allocation3], 128  }
  0x23   :  { %547 = vsyncadd [#allocation3], 4294967168 }
  0x24   :  { %548 = dma.done.wait [#allocation6], 4416  }
  0x25   :  { %549 = vsyncadd [#allocation6], 4294962880  ;;  %v557_v0 = vmov 0.0   ;;  %vm558_vm0 = vmmov 0   ;;  %v54_v1 = vld [vmem:[#allocation5 + $0x8] sm:$0xff]  ;;  %v53_v2 = vld [vmem:[#allocation5] sm:$0xff] }
  0x26   :  { %379 = vmatprep.subr.mxu0 %v557_v0  ;;  %383 = vmatprep.mubr.msk.f32.mxu0 %vm558_vm0, %v557_v0  ;;  %v52_v3 = vld [vmem:[#allocation2] sm:$0xff]  ;;  %vm60_vm1 = vcmask 130048   ;;  %v150_v4 = vld [vmem:[#allocation5 + $0x88] sm:$0xff]  ;;  %v149_v5 = vld [vmem:[#allocation5 + $0x80] sm:$0xff]  ;;  %s559_s0 = smov [#allocation8]   ;;  %vm320_vm2 = vcmask 64512  }
  0x27   :  { %386 = vmatprep.subr.mxu1 %v557_v0  ;;  %418 = vmatprep.mubr.msk.f32.mxu1 %vm558_vm0, %v557_v0  ;;  %v148_v6 = vld [vmem:[#allocation5 + $0x78] sm:$0xff]  ;;  %v147_v7 = vld [vmem:[#allocation5 + $0x70] sm:$0xff]  ;;  %v146_v8 = vld [vmem:[#allocation5 + $0x68] sm:$0xff]  ;;  %s328_s2 = sshll.u32 %s559_s0, 4  ;;  %s329_s2 = int_to_ptr.vmem [resolvable:$true] %s328_s2 }
  0x28   :  { %380 = vmatpush3.msra.mxu0 %v54_v1  ;;  %387 = vmatpush3.msra.mxu1 %v150_v4  ;;  %v145_v9 = vld [vmem:[#allocation5 + $0x60] sm:$0xff]  ;;  %v144_v10 = vld [vmem:[#allocation5 + $0x58] sm:$0xff]  ;;  %v143_v11 = vld [vmem:[#allocation5 + $0x50] sm:$0xff]  ;;  %s526_s28 = scalar_lea.vmem %s329_s2, 128  ;;  %p531_p2 = scmp.lt.s32.totalorder %s329_s2, %s329_s2 }
  0x29   :  { %381 = vmatprep.subr.mxu0 %v557_v0  ;;  %388 = vmatprep.subr.mxu1 %v557_v0  ;;  %v142_v12 = vld [vmem:[#allocation5 + $0x48] sm:$0xff]  ;;  %v141_v13 = vld [vmem:[#allocation5 + $0x40] sm:$0xff]  ;;  %v140_v14 = vld [vmem:[#allocation5 + $0x38] sm:$0xff]  ;;  %p527_p1 = scmp.ne.s32.totalorder %s329_s2, %s526_s28  ;;  %p532_p3 = scmp.lt.s32.totalorder %s526_s28, %s526_s28 }
  0x2a   :  { %382 = vmatpush3.msra.mxu0 %v53_v2  ;;  %389 = vmatpush3.msra.mxu1 %v149_v5  ;;  %v139_v15 = vld [vmem:[#allocation5 + $0x30] sm:$0xff]  ;;  %v138_v16 = vld [vmem:[#allocation5 + $0x28] sm:$0xff]  ;;  %v137_v17 = vld [vmem:[#allocation5 + $0x20] sm:$0xff] }
  0x2b   :  { %384 = vmatmul.mubr.msk.f32.vlgmr.msra.gmra.mxu0 %vm60_vm1, %v52_v3  ;;  %390 = vmatprep.subr.mxu1 %v557_v0  ;;  %v136_v18 = vld [vmem:[#allocation5 + $0x18] sm:$0xff]  ;;  %v135_v19 = vld [vmem:[#allocation5 + $0x10] sm:$0xff]  ;;  %v242_v20 = vld [vmem:[#allocation5 + $0x108] sm:$0xff]  ;;  %p533_p4 = por %p532_p3, %p531_p2 }
  0x2c   :  { %421 = vmatprep.subr.mxu0 %v557_v0  ;;  %391 = vmatpush3.msra.mxu1 %v148_v6  ;;  %v241_v21 = vld [vmem:[#allocation5 + $0x100] sm:$0xff]  ;;  %v240_v22 = vld [vmem:[#allocation5 + $0xf8] sm:$0xff]  ;;  %v239_v23 = vld [vmem:[#allocation5 + $0xf0] sm:$0xff] }
  0x2d   :  { %453 = vmatprep.mubr.msk.f32.mxu0 %vm558_vm0, %v557_v0  ;;  %392 = vmatprep.subr.mxu1 %v557_v0  ;;  %v238_v24 = vld [vmem:[#allocation5 + $0xe8] sm:$0xff]  ;;  %v237_v25 = vld [vmem:[#allocation5 + $0xe0] sm:$0xff]  ;;  %v236_v26 = vld [vmem:[#allocation5 + $0xd8] sm:$0xff]  ;;  %p534_p5 = pnand %p533_p4, %p527_p1 }
  0x2e   :  { %393 = vmatpush3.msra.mxu1 %v147_v7  ;;  %422 = vmatpush3.msra.mxu0 %v242_v20  ;;  %v235_v27 = vld [vmem:[#allocation5 + $0xd0] sm:$0xff]  ;;  %v234_v28 = vld [vmem:[#allocation5 + $0xc8] sm:$0xff]  ;;  %v233_v29 = vld [vmem:[#allocation5 + $0xc0] sm:$0xff] }
  0x2f   :  { %394 = vmatprep.subr.mxu1 %v557_v0  ;;  %423 = vmatprep.subr.mxu0 %v557_v0  ;;  %v232_v30 = vld [vmem:[#allocation5 + $0xb8] sm:$0xff]  ;;  %v231_v31 = vld [vmem:[#allocation5 + $0xb0] sm:$0xff]  ;;  %v230_v32 = vld [vmem:[#allocation5 + $0xa8] sm:$0xff] }
  0x30   :  { %395 = vmatpush3.msra.mxu1 %v146_v8  ;;  %424 = vmatpush3.msra.mxu0 %v241_v21  ;;  %v338_v33 = vld [vmem:[#allocation7] ss:$0 sm:$0xff]  ;;  %v229_v38 = vld [vmem:[#allocation5 + $0xa0] sm:$0xff]  ;;  %v228_v39 = vld [vmem:[#allocation5 + $0x98] sm:$0xff] }
  0x31   :  { %396 = vmatprep.subr.mxu1 %v557_v0  ;;  %425 = vmatprep.subr.mxu0 %v557_v0  ;;  %v227_v40 = vld [vmem:[#allocation5 + $0x90] sm:$0xff] }
  0x32   :  { %397 = vmatpush3.msra.mxu1 %v145_v9  ;;  %426 = vmatpush3.msra.mxu0 %v240_v22  ;;  %v340_v41 = vld [vmem:[#allocation7 + $0x1] ss:$0 sm:$0xff]  ;;  %v341_v46 = vld [vmem:[#allocation7 + $0x2] ss:$0 sm:$0xff] }
  0x33   :  { %398 = vmatprep.subr.mxu1 %v557_v0  ;;  %427 = vmatprep.subr.mxu0 %v557_v0 }
  0x34   :  { %399 = vmatpush3.msra.mxu1 %v144_v10  ;;  %428 = vmatpush3.msra.mxu0 %v239_v23 }
  0x35   :  { %400 = vmatprep.subr.mxu1 %v557_v0  ;;  %429 = vmatprep.subr.mxu0 %v557_v0 }
  0x36   :  { %401 = vmatpush3.msra.mxu1 %v143_v11  ;;  %430 = vmatpush3.msra.mxu0 %v238_v24 }
  0x37   :  { %402 = vmatprep.subr.mxu1 %v557_v0  ;;  %431 = vmatprep.subr.mxu0 %v557_v0 }
  0x38   :  { %403 = vmatpush3.msra.mxu1 %v142_v12  ;;  %432 = vmatpush3.msra.mxu0 %v237_v25 }
  0x39   :  { %404 = vmatprep.subr.mxu1 %v557_v0  ;;  %433 = vmatprep.subr.mxu0 %v557_v0 }
  0x3a   :  { %405 = vmatpush3.msra.mxu1 %v141_v13  ;;  %434 = vmatpush3.msra.mxu0 %v236_v26 }
  0x3b   :  { %406 = vmatprep.subr.mxu1 %v557_v0  ;;  %435 = vmatprep.subr.mxu0 %v557_v0 }
  0x3c   :  { %407 = vmatpush3.msra.mxu1 %v140_v14  ;;  %436 = vmatpush3.msra.mxu0 %v235_v27 }
  0x3d   :  { %408 = vmatprep.subr.mxu1 %v557_v0  ;;  %437 = vmatprep.subr.mxu0 %v557_v0 }
  0x3e   :  { %409 = vmatpush3.msra.mxu1 %v139_v15  ;;  %438 = vmatpush3.msra.mxu0 %v234_v28 }
  0x3f   :  { %410 = vmatprep.subr.mxu1 %v557_v0  ;;  %439 = vmatprep.subr.mxu0 %v557_v0 }
  0x40   :  { %411 = vmatpush3.msra.mxu1 %v138_v16  ;;  %440 = vmatpush3.msra.mxu0 %v233_v29 }
  0x41   :  { %412 = vmatprep.subr.mxu1 %v557_v0  ;;  %441 = vmatprep.subr.mxu0 %v557_v0 }
  0x42   :  { %413 = vmatpush3.msra.mxu1 %v137_v17  ;;  %442 = vmatpush3.msra.mxu0 %v232_v30 }
  0x43   :  { %414 = vmatprep.subr.mxu1 %v557_v0  ;;  %443 = vmatprep.subr.mxu0 %v557_v0 }
  0x44   :  { %415 = vmatpush3.msra.mxu1 %v136_v18  ;;  %444 = vmatpush3.msra.mxu0 %v231_v31 }
  0x45   :  { %416 = vmatprep.subr.mxu1 %v557_v0  ;;  %445 = vmatprep.subr.mxu0 %v557_v0 }
  0x46   :  { %417 = vmatpush3.msra.mxu1 %v135_v19  ;;  %446 = vmatpush3.msra.mxu0 %v230_v32 }
  0x47   :  { %447 = vmatprep.subr.mxu0 %v557_v0 }
  0x48   :  { %448 = vmatpush3.msra.mxu0 %v229_v38 }
  0x49   :  { %449 = vmatprep.subr.mxu0 %v557_v0 }
  0x4a   :  { %450 = vmatpush3.msra.mxu0 %v228_v39 }
  0x4b   :  { %451 = vmatprep.subr.mxu0 %v557_v0 }
  0x4c   :  { %452 = vmatpush3.msra.mxu0 %v227_v40 }
  0xeb   :  { %v130_v34 = vpop.f32.mrf.mxu0 }
  0xec   :  { %v131_v35 = vadd.f32 %v338_v33, %v130_v34 }
  0xed   :  { %v385_v36 = vpop.f32.mrf.mxu0 }
  0xee   :  { %v134_v37 = vmax.f32 %v131_v35, 0.0 }
  0xf0   :  { %419 = vmatmul.mubr.f32.vlgmr.msra.gmra.mxu1 %v134_v37 }
 0x1b0   :  { %v222_v42 = vpop.f32.mrf.mxu1 }
 0x1b1   :  { %v223_v43 = vadd.f32 %v340_v41, %v222_v42 }
 0x1b2   :  { %v420_v44 = vpop.f32.mrf.mxu1 }
 0x1b3   :  { %v226_v45 = vmax.f32 %v223_v43, 0.0 }
 0x1b5   :  { %454 = vmatmul.mubr.f32.vlgmr.msra.gmra.mxu0 %v226_v45 }
 0x275   :  { %v314_v47 = vpop.f32.mrf.mxu0 }
 0x276   :  { %v315_v48 = vadd.f32 %v341_v46, %v314_v47 }
 0x277   :  { %v455_v49 = vpop.f32.mrf.mxu0 }
 0x278   :  { %464 = vtanh.f32 %v315_v48 }
 0x285   :  { %v465_v50 = vpop.eup %464 }
 0x286   :  { %v319_v51 = vmul.f32 2.0, %v465_v50 }
 0x288   :  { %321 = vst.msk [vmem:[#allocation8] sm:$0xff] %vm320_vm2, %v319_v51 }
 0x289   :  { %537 = shalt.err (!%p534_p5)
}
 0x28a   :  { %331 = dma.vmem_to_hbm [thread:$0]  %s329_s2, 128, %s635_s3, [#allocation4]  }
 0x28b   :  { %550 = dma.done.wait [#allocation4], 128  }
 0x28c   :  { %551 = vsyncadd [#allocation4], 4294967168 }
 0x28d   :  { %335 = vsyncpa [#allocation3], 1 }
 0x28e   :  { %336 = vsyncpa [#allocation6], 1 }
 0x28f   :  { %337 = vsyncpa [#allocation4], 1 }

</bundles_post_ra>
